<compile_context>
chip_gen: v5e
topology: v5e:2x2
jax: 0.10.0
libtpu: 0.0.40
codegen_flags: <defaults>
</compile_context>

<pallas_src>
import jax
import jax.numpy as jnp
from jax.experimental import pallas as pl
from jax.experimental.pallas import tpu as pltpu


def _round_up(n, m):
    return ((n + m - 1) // m) * m


def autoencoder_kernel(x_ref,
                       w1_ref, b1_ref, w2_ref, b2_ref, w3_ref, b3_ref,
                       w4_ref, b4_ref, w5_ref, b5_ref, w6_ref, b6_ref,
                       out_ref):
    """One (TB, D) batch tile of the fused autoencoder forward pass."""
    # (TB, D) contiguous block -> (D, TB): put the big batch tile on the
    # 128-wide lane axis so every matmul has N = TB and all elementwise work
    # runs on dense vregs.  The transpose lives on the XLU slot.
    h = jnp.transpose(x_ref[...]).astype(jnp.float32)        # (D, TB)

    def linear(h, w_ref, b_ref):
        # Weights already bf16 (pre-cast in wrapper); f32 accumulation.
        y = jnp.dot(w_ref[...], h.astype(jnp.bfloat16),
                    preferred_element_type=jnp.float32)       # (out, TB)
        return y + b_ref[...]                                  # b is (out, 1)

    # encoder
    h = jnp.maximum(linear(h, w1_ref, b1_ref), 0.0)
    h = jnp.maximum(linear(h, w2_ref, b2_ref), 0.0)
    h = linear(h, w3_ref, b3_ref)                              # encoded (4, TB)

    # decoder
    h = jnp.maximum(linear(h, w4_ref, b4_ref), 0.0)
    h = jnp.maximum(linear(h, w5_ref, b5_ref), 0.0)
    h = linear(h, w6_ref, b6_ref)                              # logits (D, TB)

    # Sigmoid: exp + approximate reciprocal both land on the EUP slot.
    y = pl.reciprocal(1.0 + jnp.exp(-h), approx=True)          # (D, TB), f32

    # (D, TB) -> (TB, D) and store the contiguous row-major block.
    out_ref[...] = jnp.transpose(y).astype(out_ref.dtype)


def autoencoder_forward(x, params, *, target_tb=4096, min_steps=2):
    """x: (batch, D) float32.  params: list of (W, b) in PyTorch layout
    W=(out_features, in_features), b=(out_features,).  Returns (batch, D)."""
    batch, d = x.shape

    # Batch tile: big enough to amortize per-grid-step overhead, but keep at
    # least `min_steps` grid steps (so the "parallel" batch axis splits across
    # both TensorCores on v7x) and avoid huge dead padding on small batches.
    # Multiple of 256 keeps dense (8,128)-aligned tiles.
    tb = max(256, min(target_tb, _round_up(pl.cdiv(batch, min_steps), 256)))
    padded = _round_up(batch, tb)
    if padded != batch:
        x = jnp.pad(x, ((0, padded - batch), (0, 0)))

    flat = []
    for w, b in params:
        # Pre-cast weights to bf16 once (MXU inputs); biases stay f32, shaped
        # (out, 1) so the bias add lane-broadcasts in the (features, TB) frame.
        flat.extend([w.astype(jnp.bfloat16),
                     b.reshape(-1, 1).astype(jnp.float32)])

    # Weights/biases: full-extent blocks, VMEM-resident across all grid steps.
    resident = lambda a: pl.BlockSpec(a.shape, lambda i: (0, 0))

    out = pl.pallas_call(
        autoencoder_kernel,
        out_shape=jax.ShapeDtypeStruct((padded, d), x.dtype),
        grid=(padded // tb,),
        in_specs=[pl.BlockSpec((tb, d), lambda i: (i, 0))]
                 + [resident(a) for a in flat],
        out_specs=pl.BlockSpec((tb, d), lambda i: (i, 0)),
        compiler_params=pltpu.CompilerParams(
            dimension_semantics=("parallel",)),
    )(x, *flat)

    # Padded rows carry garbage through the network; discard them here.
    return out[:batch]


def init_params(key, input_dim):
    """Deterministic init mimicking torch.nn.Linear default (U[-1/sqrt(fan_in), +]).
    Weights are kept in PyTorch layout: (out_features, in_features)."""
    dims = [input_dim, 16, 8, 4, 8, 16, input_dim]
    params = []
    for i in range(len(dims) - 1):
        fan_in, fan_out = dims[i], dims[i + 1]
        key, kw, kb = jax.random.split(key, 3)
        bound = 1.0 / jnp.sqrt(jnp.float32(fan_in))
        w = jax.random.uniform(kw, (fan_out, fan_in), jnp.float32, -bound, bound)
        b = jax.random.uniform(kb, (fan_out,), jnp.float32, -bound, bound)
        params.append((w, b))
    return params


def reference_forward(x, params):
    """Pure-JAX f32 reference matching the PyTorch module."""
    h = x
    for i, (w, b) in enumerate(params):
        h = h @ w.T + b
        if i in (0, 1, 3, 4):          # ReLU after enc layers 1,2 and dec layers 1,2
            h = jnp.maximum(h, 0.0)
    return jax.nn.sigmoid(h)


if __name__ == "__main__":
    key = jax.random.PRNGKey(0)
    batch, input_dim = 1000, 32        # non-multiple of TB to exercise padding path

    kx, kp = jax.random.split(key)
    x = jax.random.normal(kx, (batch, input_dim), jnp.float32)
    params = init_params(kp, input_dim)

    out = jax.block_until_ready(autoencoder_forward(x, params))

    ref = reference_forward(x, params)
    assert out.shape == (batch, input_dim)
    err = float(jnp.max(jnp.abs(out - ref)))
    # bf16 matmuls + approx reciprocal vs f32 reference; sigmoid output in [0,1].
    assert err < 2e-2, f"mismatch vs pure-JAX reference: max |err| = {err}"

    print("KERNEL_OK")
</pallas_src>

<mosaic_0001>
module attributes {stable_mosaic.version = 11 : i64} {
  func.func @autoencoder_kernel(%arg0: i32, %arg1: memref<512x32xf32, #tpu.memory_space<vmem>>, %arg2: memref<16x32xbf16, #tpu.memory_space<vmem>>, %arg3: memref<16x1xf32, #tpu.memory_space<vmem>>, %arg4: memref<8x16xbf16, #tpu.memory_space<vmem>>, %arg5: memref<8x1xf32, #tpu.memory_space<vmem>>, %arg6: memref<4x8xbf16, #tpu.memory_space<vmem>>, %arg7: memref<4x1xf32, #tpu.memory_space<vmem>>, %arg8: memref<8x4xbf16, #tpu.memory_space<vmem>>, %arg9: memref<8x1xf32, #tpu.memory_space<vmem>>, %arg10: memref<16x8xbf16, #tpu.memory_space<vmem>>, %arg11: memref<16x1xf32, #tpu.memory_space<vmem>>, %arg12: memref<32x16xbf16, #tpu.memory_space<vmem>>, %arg13: memref<32x1xf32, #tpu.memory_space<vmem>>, %arg14: memref<512x32xf32, #tpu.memory_space<vmem>>) attributes {dimension_semantics = [#tpu.dimension_semantics<parallel>], iteration_bounds = array<i64: 2>, scalar_prefetch = 0 : i64, scratch_operands = 0 : i64, tpu.core_type = #tpu.core_type<tc>, window_params = [{transform_indices = @transform_0, window_bounds = array<i64: 512, 32>}, {pipeline_mode = #tpu.pipeline_mode<synchronous>, transform_indices = @transform_1, window_bounds = array<i64: 16, 32>}, {pipeline_mode = #tpu.pipeline_mode<synchronous>, transform_indices = @transform_2, window_bounds = array<i64: 16, 1>}, {pipeline_mode = #tpu.pipeline_mode<synchronous>, transform_indices = @transform_3, window_bounds = array<i64: 8, 16>}, {pipeline_mode = #tpu.pipeline_mode<synchronous>, transform_indices = @transform_4, window_bounds = array<i64: 8, 1>}, {pipeline_mode = #tpu.pipeline_mode<synchronous>, transform_indices = @transform_5, window_bounds = array<i64: 4, 8>}, {pipeline_mode = #tpu.pipeline_mode<synchronous>, transform_indices = @transform_6, window_bounds = array<i64: 4, 1>}, {pipeline_mode = #tpu.pipeline_mode<synchronous>, transform_indices = @transform_7, window_bounds = array<i64: 8, 4>}, {pipeline_mode = #tpu.pipeline_mode<synchronous>, transform_indices = @transform_8, window_bounds = array<i64: 8, 1>}, {pipeline_mode = #tpu.pipeline_mode<synchronous>, transform_indices = @transform_9, window_bounds = array<i64: 16, 8>}, {pipeline_mode = #tpu.pipeline_mode<synchronous>, transform_indices = @transform_10, window_bounds = array<i64: 16, 1>}, {pipeline_mode = #tpu.pipeline_mode<synchronous>, transform_indices = @transform_11, window_bounds = array<i64: 32, 16>}, {pipeline_mode = #tpu.pipeline_mode<synchronous>, transform_indices = @transform_12, window_bounds = array<i64: 32, 1>}, {transform_indices = @transform_13, window_bounds = array<i64: 512, 32>}]} {
    %c0 = arith.constant 0 : index
    %c0_0 = arith.constant 0 : index
    %0 = vector.load %arg1[%c0, %c0_0] : memref<512x32xf32, #tpu.memory_space<vmem>>, vector<512x32xf32>
    %1 = tpu.transpose %0, [1, 0] : vector<512x32xf32> -> vector<32x512xf32>
    %c0_1 = arith.constant 0 : index
    %c0_2 = arith.constant 0 : index
    %2 = vector.load %arg2[%c0_1, %c0_2] : memref<16x32xbf16, #tpu.memory_space<vmem>>, vector<16x32xbf16>
    %3 = arith.truncf %1 : vector<32x512xf32> to vector<32x512xbf16>
    %cst = arith.constant dense<0.000000e+00> : vector<16x512xf32>
    %4 = tpu.matmul %2, %3, %cst {dimension_numbers = #tpu.dot_dimension_numbers<[1], [0], [0], [1], [0, 0, 1, 1], [], []>} : vector<16x32xbf16>, vector<32x512xbf16>, vector<16x512xf32> -> vector<16x512xf32>
    %c0_3 = arith.constant 0 : index
    %c0_4 = arith.constant 0 : index
    %5 = vector.load %arg3[%c0_3, %c0_4] : memref<16x1xf32, #tpu.memory_space<vmem>>, vector<16x1xf32>
    %6 = vector.broadcast %5 : vector<16x1xf32> to vector<16x512xf32>
    %7 = arith.addf %4, %6 : vector<16x512xf32>
    %cst_5 = arith.constant 0.000000e+00 : f32
    %8 = vector.broadcast %cst_5 : f32 to vector<16x512xf32>
    %9 = arith.maximumf %7, %8 : vector<16x512xf32>
    %c0_6 = arith.constant 0 : index
    %c0_7 = arith.constant 0 : index
    %10 = vector.load %arg4[%c0_6, %c0_7] : memref<8x16xbf16, #tpu.memory_space<vmem>>, vector<8x16xbf16>
    %11 = arith.truncf %9 : vector<16x512xf32> to vector<16x512xbf16>
    %cst_8 = arith.constant dense<0.000000e+00> : vector<8x512xf32>
    %12 = tpu.matmul %10, %11, %cst_8 {dimension_numbers = #tpu.dot_dimension_numbers<[1], [0], [0], [1], [0, 0, 1, 1], [], []>} : vector<8x16xbf16>, vector<16x512xbf16>, vector<8x512xf32> -> vector<8x512xf32>
    %c0_9 = arith.constant 0 : index
    %c0_10 = arith.constant 0 : index
    %13 = vector.load %arg5[%c0_9, %c0_10] : memref<8x1xf32, #tpu.memory_space<vmem>>, vector<8x1xf32>
    %14 = vector.broadcast %13 : vector<8x1xf32> to vector<8x512xf32>
    %15 = arith.addf %12, %14 : vector<8x512xf32>
    %cst_11 = arith.constant 0.000000e+00 : f32
    %16 = vector.broadcast %cst_11 : f32 to vector<8x512xf32>
    %17 = arith.maximumf %15, %16 : vector<8x512xf32>
    %c0_12 = arith.constant 0 : index
    %c0_13 = arith.constant 0 : index
    %18 = vector.load %arg6[%c0_12, %c0_13] : memref<4x8xbf16, #tpu.memory_space<vmem>>, vector<4x8xbf16>
    %19 = arith.truncf %17 : vector<8x512xf32> to vector<8x512xbf16>
    %cst_14 = arith.constant dense<0.000000e+00> : vector<4x512xf32>
    %20 = tpu.matmul %18, %19, %cst_14 {dimension_numbers = #tpu.dot_dimension_numbers<[1], [0], [0], [1], [0, 0, 1, 1], [], []>} : vector<4x8xbf16>, vector<8x512xbf16>, vector<4x512xf32> -> vector<4x512xf32>
    %c0_15 = arith.constant 0 : index
    %c0_16 = arith.constant 0 : index
    %21 = vector.load %arg7[%c0_15, %c0_16] : memref<4x1xf32, #tpu.memory_space<vmem>>, vector<4x1xf32>
    %22 = vector.broadcast %21 : vector<4x1xf32> to vector<4x512xf32>
    %23 = arith.addf %20, %22 : vector<4x512xf32>
    %c0_17 = arith.constant 0 : index
    %c0_18 = arith.constant 0 : index
    %24 = vector.load %arg8[%c0_17, %c0_18] : memref<8x4xbf16, #tpu.memory_space<vmem>>, vector<8x4xbf16>
    %25 = arith.truncf %23 : vector<4x512xf32> to vector<4x512xbf16>
    %cst_19 = arith.constant dense<0.000000e+00> : vector<8x512xf32>
    %26 = tpu.matmul %24, %25, %cst_19 {dimension_numbers = #tpu.dot_dimension_numbers<[1], [0], [0], [1], [0, 0, 1, 1], [], []>} : vector<8x4xbf16>, vector<4x512xbf16>, vector<8x512xf32> -> vector<8x512xf32>
    %c0_20 = arith.constant 0 : index
    %c0_21 = arith.constant 0 : index
    %27 = vector.load %arg9[%c0_20, %c0_21] : memref<8x1xf32, #tpu.memory_space<vmem>>, vector<8x1xf32>
    %28 = vector.broadcast %27 : vector<8x1xf32> to vector<8x512xf32>
    %29 = arith.addf %26, %28 : vector<8x512xf32>
    %cst_22 = arith.constant 0.000000e+00 : f32
    %30 = vector.broadcast %cst_22 : f32 to vector<8x512xf32>
    %31 = arith.maximumf %29, %30 : vector<8x512xf32>
    %c0_23 = arith.constant 0 : index
    %c0_24 = arith.constant 0 : index
    %32 = vector.load %arg10[%c0_23, %c0_24] : memref<16x8xbf16, #tpu.memory_space<vmem>>, vector<16x8xbf16>
    %33 = arith.truncf %31 : vector<8x512xf32> to vector<8x512xbf16>
    %cst_25 = arith.constant dense<0.000000e+00> : vector<16x512xf32>
    %34 = tpu.matmul %32, %33, %cst_25 {dimension_numbers = #tpu.dot_dimension_numbers<[1], [0], [0], [1], [0, 0, 1, 1], [], []>} : vector<16x8xbf16>, vector<8x512xbf16>, vector<16x512xf32> -> vector<16x512xf32>
    %c0_26 = arith.constant 0 : index
    %c0_27 = arith.constant 0 : index
    %35 = vector.load %arg11[%c0_26, %c0_27] : memref<16x1xf32, #tpu.memory_space<vmem>>, vector<16x1xf32>
    %36 = vector.broadcast %35 : vector<16x1xf32> to vector<16x512xf32>
    %37 = arith.addf %34, %36 : vector<16x512xf32>
    %cst_28 = arith.constant 0.000000e+00 : f32
    %38 = vector.broadcast %cst_28 : f32 to vector<16x512xf32>
    %39 = arith.maximumf %37, %38 : vector<16x512xf32>
    %c0_29 = arith.constant 0 : index
    %c0_30 = arith.constant 0 : index
    %40 = vector.load %arg12[%c0_29, %c0_30] : memref<32x16xbf16, #tpu.memory_space<vmem>>, vector<32x16xbf16>
    %41 = arith.truncf %39 : vector<16x512xf32> to vector<16x512xbf16>
    %cst_31 = arith.constant dense<0.000000e+00> : vector<32x512xf32>
    %42 = tpu.matmul %40, %41, %cst_31 {dimension_numbers = #tpu.dot_dimension_numbers<[1], [0], [0], [1], [0, 0, 1, 1], [], []>} : vector<32x16xbf16>, vector<16x512xbf16>, vector<32x512xf32> -> vector<32x512xf32>
    %c0_32 = arith.constant 0 : index
    %c0_33 = arith.constant 0 : index
    %43 = vector.load %arg13[%c0_32, %c0_33] : memref<32x1xf32, #tpu.memory_space<vmem>>, vector<32x1xf32>
    %44 = vector.broadcast %43 : vector<32x1xf32> to vector<32x512xf32>
    %45 = arith.addf %42, %44 : vector<32x512xf32>
    %cst_34 = arith.constant 0.000000e+00 : f32
    %46 = vector.broadcast %cst_34 : f32 to vector<32x512xf32>
    %47 = arith.subf %46, %45 : vector<32x512xf32>
    %48 = math.exp %47 : vector<32x512xf32>
    %cst_35 = arith.constant 1.000000e+00 : f32
    %49 = vector.broadcast %cst_35 : f32 to vector<32x512xf32>
    %50 = arith.addf %49, %48 : vector<32x512xf32>
    %51 = tpu.reciprocal %50 {approx = true} : vector<32x512xf32> -> vector<32x512xf32>
    %52 = tpu.transpose %51, [1, 0] : vector<32x512xf32> -> vector<512x32xf32>
    %c0_36 = arith.constant 0 : index
    %c0_37 = arith.constant 0 : index
    %53 = vector.load %arg14[%c0_36, %c0_37] : memref<512x32xf32, #tpu.memory_space<vmem>>, vector<512x32xf32>
    tpu.vector_store %arg14[%c0_36, %c0_37], %52 {strides = array<i32>} : memref<512x32xf32, #tpu.memory_space<vmem>>, vector<512x32xf32>,
    return
  }
  func.func @transform_0(%arg0: i32) -> (i32, i32) {
    %c0_i32 = arith.constant 0 : i32
    %c0_i32_0 = arith.constant 0 : i32
    return %arg0, %c0_i32 : i32, i32
  }
  func.func @transform_1(%arg0: i32) -> (i32, i32) {
    %c0_i32 = arith.constant 0 : i32
    %c0_i32_0 = arith.constant 0 : i32
    %c0_i32_1 = arith.constant 0 : i32
    return %c0_i32, %c0_i32_0 : i32, i32
  }
  func.func @transform_2(%arg0: i32) -> (i32, i32) {
    %c0_i32 = arith.constant 0 : i32
    %c0_i32_0 = arith.constant 0 : i32
    %c0_i32_1 = arith.constant 0 : i32
    return %c0_i32, %c0_i32_0 : i32, i32
  }
  func.func @transform_3(%arg0: i32) -> (i32, i32) {
    %c0_i32 = arith.constant 0 : i32
    %c0_i32_0 = arith.constant 0 : i32
    %c0_i32_1 = arith.constant 0 : i32
    return %c0_i32, %c0_i32_0 : i32, i32
  }
  func.func @transform_4(%arg0: i32) -> (i32, i32) {
    %c0_i32 = arith.constant 0 : i32
    %c0_i32_0 = arith.constant 0 : i32
    %c0_i32_1 = arith.constant 0 : i32
    return %c0_i32, %c0_i32_0 : i32, i32
  }
  func.func @transform_5(%arg0: i32) -> (i32, i32) {
    %c0_i32 = arith.constant 0 : i32
    %c0_i32_0 = arith.constant 0 : i32
    %c0_i32_1 = arith.constant 0 : i32
    return %c0_i32, %c0_i32_0 : i32, i32
  }
  func.func @transform_6(%arg0: i32) -> (i32, i32) {
    %c0_i32 = arith.constant 0 : i32
    %c0_i32_0 = arith.constant 0 : i32
    %c0_i32_1 = arith.constant 0 : i32
    return %c0_i32, %c0_i32_0 : i32, i32
  }
  func.func @transform_7(%arg0: i32) -> (i32, i32) {
    %c0_i32 = arith.constant 0 : i32
    %c0_i32_0 = arith.constant 0 : i32
    %c0_i32_1 = arith.constant 0 : i32
    return %c0_i32, %c0_i32_0 : i32, i32
  }
  func.func @transform_8(%arg0: i32) -> (i32, i32) {
    %c0_i32 = arith.constant 0 : i32
    %c0_i32_0 = arith.constant 0 : i32
    %c0_i32_1 = arith.constant 0 : i32
    return %c0_i32, %c0_i32_0 : i32, i32
  }
  func.func @transform_9(%arg0: i32) -> (i32, i32) {
    %c0_i32 = arith.constant 0 : i32
    %c0_i32_0 = arith.constant 0 : i32
    %c0_i32_1 = arith.constant 0 : i32
    return %c0_i32, %c0_i32_0 : i32, i32
  }
  func.func @transform_10(%arg0: i32) -> (i32, i32) {
    %c0_i32 = arith.constant 0 : i32
    %c0_i32_0 = arith.constant 0 : i32
    %c0_i32_1 = arith.constant 0 : i32
    return %c0_i32, %c0_i32_0 : i32, i32
  }
  func.func @transform_11(%arg0: i32) -> (i32, i32) {
    %c0_i32 = arith.constant 0 : i32
    %c0_i32_0 = arith.constant 0 : i32
    %c0_i32_1 = arith.constant 0 : i32
    return %c0_i32, %c0_i32_0 : i32, i32
  }
  func.func @transform_12(%arg0: i32) -> (i32, i32) {
    %c0_i32 = arith.constant 0 : i32
    %c0_i32_0 = arith.constant 0 : i32
    %c0_i32_1 = arith.constant 0 : i32
    return %c0_i32, %c0_i32_0 : i32, i32
  }
  func.func @transform_13(%arg0: i32) -> (i32, i32) {
    %c0_i32 = arith.constant 0 : i32
    %c0_i32_0 = arith.constant 0 : i32
    return %arg0, %c0_i32 : i32, i32
  }
}

</mosaic_0001>

<bundles_post_ra>
// kernel: tpu_custom_call.1
= control target key start
LH: loop header
LB: loop body
LE: loop exit
PB: predicated region body
PF: predicated region fallthrough
CT: control target
= control target key end

     0   :  { %s1839_s25 = smov 0   ;;  %s2179_s0 = inlined_call_operand.vmem [shape: f32[1024,32], index: 0, kind: input, shape index: {}]   ;;  %s2180_s1 = inlined_call_operand.vmem [shape: bf16[16,32], index: 1, kind: input, shape index: {}]   ;;  %s2181_s2 = inlined_call_operand.vmem [shape: f32[16,1], index: 2, kind: input, shape index: {}]   ;;  %s2182_s3 = inlined_call_operand.vmem [shape: bf16[8,16], index: 3, kind: input, shape index: {}]   ;;  %s2183_s4 = inlined_call_operand.vmem [shape: f32[8,1], index: 4, kind: input, shape index: {}]   ;;  %s2184_s5 = inlined_call_operand.vmem [shape: bf16[4,8], index: 5, kind: input, shape index: {}]   ;;  %s2185_s6 = inlined_call_operand.vmem [shape: f32[4,1], index: 6, kind: input, shape index: {}]   ;;  %s2186_s7 = inlined_call_operand.vmem [shape: bf16[8,4], index: 7, kind: input, shape index: {}]   ;;  %s2187_s8 = inlined_call_operand.vmem [shape: f32[8,1], index: 8, kind: input, shape index: {}]   ;;  %s2188_s9 = inlined_call_operand.vmem [shape: bf16[16,8], index: 9, kind: input, shape index: {}]   ;;  %s2189_s10 = inlined_call_operand.vmem [shape: f32[16,1], index: 10, kind: input, shape index: {}]   ;;  %s2190_s11 = inlined_call_operand.vmem [shape: bf16[32,16], index: 11, kind: input, shape index: {}]   ;;  %s2191_s12 = inlined_call_operand.vmem [shape: f32[32,1], index: 12, kind: input, shape index: {}]   ;;  %s2192_s13 = inlined_call_operand.vmem [shape: f32[1024,32], index: 13, kind: output, shape index: {}]  }
   0x1 LB: > { %s1521_s26 = sadd.s32 4294967295, %s1766_s25   ;;  %p1525_p0 = scmp.ge.s32.totalorder %s1766_s25, 1  ;;  %s1766_s25 = sphi %s1839_s25, %s23_s25  }
   0x2   : > { %p388_p1 = scmp.lt.s32.totalorder %s1766_s25, 3 }
   0x4   : > { %p389_p2 = pnand %p1525_p0, %p388_p1 }
   0x5   : > { %s1526_s27 = sshll.u32 (!%p389_p2), %s1521_s26, 6 }
   0x6   : > { %392 = sbr.rel (%p389_p2) target bundleno = 1463 (0x5b7), region = 72  ;;  %p433_p3 = scmp.lt.s32.totalorder (!%p389_p2), %s1526_s27, 127 }
   0xb   : > { %s2194_s27 = smov (!%p433_p3, %s1526_s27), 127  ;;  %vm664_vm0 = vcmask 261120   ;;  %vm743_vm1 = vcmask 130048   ;;  %vm818_vm2 = vcmask 1043456   ;;  %vm814_vm3 = vcmask 64512  }
   0xc   : > { %s1527_s28 = sshll.u32 %s2194_s27, 3  ;;  %vm898_vm4 = vcmask 1041408   ;;  %vm894_vm5 = vcmask 31744  }
   0xd   : > { %s1855_s14 = scalar_lea.vmem %s2179_s0, %s1527_s28  ;;  %s2046_s26 = scalar_lea.vmem %s2192_s13, %s1527_s28 }
   0xe   : > { %v477_v0 = vld [vmem:[%s1855_s14 + $0x100] sm:$0xff]  ;;  %v478_v6 = vld [vmem:[%s1855_s14 + $0x108] sm:$0xff]  ;;  %v479_v12 = vld [vmem:[%s1855_s14 + $0x110] sm:$0xff] }
   0xf   : > { %v493_v1 = vld [vmem:[%s1855_s14 + $0x180] sm:$0xff]  ;;  %v494_v7 = vld [vmem:[%s1855_s14 + $0x188] sm:$0xff]  ;;  %v495_v13 = vld [vmem:[%s1855_s14 + $0x190] sm:$0xff] }
  0x10   : > { %v445_v2 = vld [vmem:[%s1855_s14] sm:$0xff]  ;;  %v1590_v3 = vpack.i.bf16 %v493_v1, %v477_v0  ;;  %v446_v8 = vld [vmem:[%s1855_s14 + $0x8] sm:$0xff]  ;;  %v1592_v10 = vpack.i.bf16 %v494_v7, %v478_v6  ;;  %v447_v14 = vld [vmem:[%s1855_s14 + $0x10] sm:$0xff]  ;;  %v1594_v16 = vpack.i.bf16 %v495_v13, %v479_v12  ;;  %v1768_v13 = vmov 0  }
  0x11   : > { %v461_v4 = vld [vmem:[%s1855_s14 + $0x80] sm:$0xff]  ;;  %v462_v9 = vld [vmem:[%s1855_s14 + $0x88] sm:$0xff]  ;;  %v463_v15 = vld [vmem:[%s1855_s14 + $0x90] sm:$0xff]  ;;  %1694 = vset.pattern.permute.xlu2 %v1768_v13 }
  0x12   : > { %v1642_v5 = vpack.i.bf16 %v461_v4, %v445_v2  ;;  %1591 = vxpose.xlu0.b32.start [1/16] (narrow) %v1590_v3, 32  ;;  %v1644_v11 = vpack.i.bf16 %v462_v9, %v446_v8  ;;  %v1646_v17 = vpack.i.bf16 %v463_v15, %v447_v14  ;;  %v480_v18 = vld [vmem:[%s1855_s14 + $0x118] sm:$0xff]  ;;  %v481_v24 = vld [vmem:[%s1855_s14 + $0x120] sm:$0xff]  ;;  %v482_v30 = vld [vmem:[%s1855_s14 + $0x128] sm:$0xff] }
  0x13   : > { %v496_v19 = vld [vmem:[%s1855_s14 + $0x198] sm:$0xff]  ;;  %v497_v25 = vld [vmem:[%s1855_s14 + $0x1a0] sm:$0xff]  ;;  %v498_v31 = vld [vmem:[%s1855_s14 + $0x1a8] sm:$0xff] }
  0x14   : > { %1643 = vxpose.xlu1.b32.start [1/16] (narrow) %v1642_v5, 32  ;;  %v448_v20 = vld [vmem:[%s1855_s14 + $0x18] sm:$0xff]  ;;  %v1596_v22 = vpack.i.bf16 %v496_v19, %v480_v18  ;;  %v449_v26 = vld [vmem:[%s1855_s14 + $0x20] sm:$0xff]  ;;  %v1598_v28 = vpack.i.bf16 %v497_v25, %v481_v24  ;;  %v450_v32 = vld [vmem:[%s1855_s14 + $0x28] sm:$0xff]  ;;  %v1600_v34 = vpack.i.bf16 %v498_v31, %v482_v30 }
  0x15   : > { %v464_v21 = vld [vmem:[%s1855_s14 + $0x98] sm:$0xff]  ;;  %v465_v27 = vld [vmem:[%s1855_s14 + $0xa0] sm:$0xff]  ;;  %v466_v33 = vld [vmem:[%s1855_s14 + $0xa8] sm:$0xff] }
  0x16   : > { %v1648_v23 = vpack.i.bf16 %v464_v21, %v448_v20  ;;  %v1650_v29 = vpack.i.bf16 %v465_v27, %v449_v26  ;;  %v1652_v35 = vpack.i.bf16 %v466_v33, %v450_v32  ;;  %v483_v36 = vld [vmem:[%s1855_s14 + $0x130] sm:$0xff]  ;;  %v484_v42 = vld [vmem:[%s1855_s14 + $0x138] sm:$0xff]  ;;  %v485_v48 = vld [vmem:[%s1855_s14 + $0x140] sm:$0xff] }
  0x17   : > { %v499_v37 = vld [vmem:[%s1855_s14 + $0x1b0] sm:$0xff]  ;;  %v500_v43 = vld [vmem:[%s1855_s14 + $0x1b8] sm:$0xff]  ;;  %v501_v49 = vld [vmem:[%s1855_s14 + $0x1c0] sm:$0xff] }
  0x18   : > { %v451_v38 = vld [vmem:[%s1855_s14 + $0x30] sm:$0xff]  ;;  %v1602_v40 = vpack.i.bf16 %v499_v37, %v483_v36  ;;  %v452_v44 = vld [vmem:[%s1855_s14 + $0x38] sm:$0xff]  ;;  %v1604_v46 = vpack.i.bf16 %v500_v43, %v484_v42  ;;  %v453_v50 = vld [vmem:[%s1855_s14 + $0x40] sm:$0xff]  ;;  %v1606_v52 = vpack.i.bf16 %v501_v49, %v485_v48 }
  0x19   : > { %v467_v39 = vld [vmem:[%s1855_s14 + $0xb0] sm:$0xff]  ;;  %v468_v45 = vld [vmem:[%s1855_s14 + $0xb8] sm:$0xff]  ;;  %v469_v51 = vld [vmem:[%s1855_s14 + $0xc0] sm:$0xff] }
  0x1a   : > { %1593 = vxpose.xlu0.b32.cont [2/16] (narrow) %v1592_v10, 32  ;;  %v1654_v41 = vpack.i.bf16 %v467_v39, %v451_v38  ;;  %v1656_v47 = vpack.i.bf16 %v468_v45, %v452_v44  ;;  %v1658_v53 = vpack.i.bf16 %v469_v51, %v453_v50  ;;  %v486_v54 = vld [vmem:[%s1855_s14 + $0x148] sm:$0xff]  ;;  %v487_v60 = vld [vmem:[%s1855_s14 + $0x150] sm:$0xff]  ;;  %v488_v2 = vld [vmem:[%s1855_s14 + $0x158] sm:$0xff] }
  0x1b   : > { %v502_v55 = vld [vmem:[%s1855_s14 + $0x1c8] sm:$0xff]  ;;  %v503_v61 = vld [vmem:[%s1855_s14 + $0x1d0] sm:$0xff]  ;;  %v504_v3 = vld [vmem:[%s1855_s14 + $0x1d8] sm:$0xff] }
  0x1c   : > { %1645 = vxpose.xlu1.b32.cont [2/16] (narrow) %v1644_v11, 32  ;;  %v454_v56 = vld [vmem:[%s1855_s14 + $0x48] sm:$0xff]  ;;  %v1608_v58 = vpack.i.bf16 %v502_v55, %v486_v54  ;;  %v455_v62 = vld [vmem:[%s1855_s14 + $0x50] sm:$0xff]  ;;  %v1610_v0 = vpack.i.bf16 %v503_v61, %v487_v60  ;;  %v456_v4 = vld [vmem:[%s1855_s14 + $0x58] sm:$0xff]  ;;  %v1612_v6 = vpack.i.bf16 %v504_v3, %v488_v2 }
  0x1d   : > { %v470_v57 = vld [vmem:[%s1855_s14 + $0xc8] sm:$0xff]  ;;  %v471_v63 = vld [vmem:[%s1855_s14 + $0xd0] sm:$0xff]  ;;  %v472_v5 = vld [vmem:[%s1855_s14 + $0xd8] sm:$0xff] }
  0x1e   : > { %v1660_v59 = vpack.i.bf16 %v470_v57, %v454_v56  ;;  %v1662_v1 = vpack.i.bf16 %v471_v63, %v455_v62  ;;  %v1664_v7 = vpack.i.bf16 %v472_v5, %v456_v4  ;;  %v489_v8 = vld [vmem:[%s1855_s14 + $0x160] sm:$0xff]  ;;  %v506_v18 = vld [vmem:[%s1855_s14 + $0x1e8] sm:$0xff]  ;;  %v507_v24 = vld [vmem:[%s1855_s14 + $0x1f0] sm:$0xff] }
  0x1f   : > { %v505_v9 = vld [vmem:[%s1855_s14 + $0x1e0] sm:$0xff]  ;;  %v458_v19 = vld [vmem:[%s1855_s14 + $0x68] sm:$0xff]  ;;  %v459_v25 = vld [vmem:[%s1855_s14 + $0x70] sm:$0xff] }
  0x20   : > { %v647_v10 = vld [vmem:[%s2181_s2] sm:$0xff]  ;;  %v1614_v14 = vpack.i.bf16 %v505_v9, %v489_v8  ;;  %v474_v20 = vld [vmem:[%s1855_s14 + $0xe8] sm:$0xff]  ;;  %v475_v26 = vld [vmem:[%s1855_s14 + $0xf0] sm:$0xff] }
  0x21   : > { %v457_v11 = vld [vmem:[%s1855_s14 + $0x60] sm:$0xff]  ;;  %651 = vperm.xlu2 %1694, %v647_v10   ;;  %v508_v30 = vld [vmem:[%s1855_s14 + $0x1f8] sm:$0xff]  ;;  %v1079_v4 = vld [vmem:[%s2191_s12 + $0x10] sm:$0xff] }
  0x22   : > { %1595 = vxpose.xlu0.b32.cont [3/16] (narrow) %v1594_v16, 32  ;;  %v473_v12 = vld [vmem:[%s1855_s14 + $0xe0] sm:$0xff]  ;;  %v648_v16 = vld [vmem:[%s2181_s2 + $0x8] sm:$0xff]  ;;  %v460_v31 = vld [vmem:[%s1855_s14 + $0x78] sm:$0xff] }
  0x23   : > { %v1666_v15 = vpack.i.bf16 %v473_v12, %v457_v11  ;;  %v476_v32 = vld [vmem:[%s1855_s14 + $0xf8] sm:$0xff]  ;;  %v808_v36 = vld [vmem:[%s2185_s6] sm:$0xf] }
  0x24   : > { %1647 = vxpose.xlu1.b32.cont [3/16] (narrow) %v1646_v17, 32  ;;  %v490_v17 = vld [vmem:[%s1855_s14 + $0x168] sm:$0xff]  ;;  %v888_v37 = vld [vmem:[%s2187_s8] sm:$0xff]  ;;  %v1080_v12 = vld [vmem:[%s2191_s12 + $0x18] sm:$0xff] }
  0x25   : > { %v1616_v21 = vpack.i.bf16 %v506_v18, %v490_v17  ;;  %v973_v38 = vld [vmem:[%s2189_s10] sm:$0xff] }
  0x26   : > { %v1077_v44 = vld [vmem:[%s2191_s12] sm:$0xff] }
  0x27   : > { %v1576_v11 = vld [vmem:[%s2180_s1] sm:$0xff] }
  0x29   : > { %656 = vperm.xlu2 %1694, %v648_v16  }
  0x2a   : > { %1597 = vxpose.xlu0.b32.cont [4/16] (narrow) %v1596_v22, 32  ;;  %v1668_v22 = vpack.i.bf16 %v474_v20, %v458_v19 }
  0x2c   : > { %1649 = vxpose.xlu1.b32.cont [4/16] (narrow) %v1648_v23, 32  ;;  %v491_v23 = vld [vmem:[%s1855_s14 + $0x170] sm:$0xff] }
  0x2d   : > { %v1618_v27 = vpack.i.bf16 %v507_v24, %v491_v23 }
  0x32   : > { %1599 = vxpose.xlu0.b32.cont [5/16] (narrow) %v1598_v28, 32  ;;  %v1670_v28 = vpack.i.bf16 %v475_v26, %v459_v25 }
  0x34   : > { %1651 = vxpose.xlu1.b32.cont [5/16] (narrow) %v1650_v29, 32  ;;  %v492_v29 = vld [vmem:[%s1855_s14 + $0x178] sm:$0xff] }
  0x35   : > { %v1620_v33 = vpack.i.bf16 %v508_v30, %v492_v29 }
  0x3a   : > { %1601 = vxpose.xlu0.b32.cont [6/16] (narrow) %v1600_v34, 32  ;;  %v1672_v34 = vpack.i.bf16 %v476_v32, %v460_v31 }
  0x3c   : > { %1653 = vxpose.xlu1.b32.cont [6/16] (narrow) %v1652_v35, 32  ;;  %v737_v35 = vld [vmem:[%s2183_s4] sm:$0xff] }
  0x3d   : > { %740 = vperm.xlu2 %1694, %v737_v35  }
  0x42   : > { %1603 = vxpose.xlu0.b32.cont [7/16] (narrow) %v1602_v40, 32 }
  0x44   : > { %1655 = vxpose.xlu1.b32.cont [7/16] (narrow) %v1654_v41, 32  ;;  %v974_v41 = vld [vmem:[%s2189_s10 + $0x8] sm:$0xff] }
  0x45   : > { %811 = vperm.xlu2 %1694, %v808_v36  }
  0x4a   : > { %1605 = vxpose.xlu0.b32.cont [8/16] (narrow) %v1604_v46, 32 }
  0x4c   : > { %1657 = vxpose.xlu1.b32.cont [8/16] (narrow) %v1656_v47, 32  ;;  %v1078_v47 = vld [vmem:[%s2191_s12 + $0x8] sm:$0xff] }
  0x4d   : > { %891 = vperm.xlu2 %1694, %v888_v37  }
  0x52   : > { %1607 = vxpose.xlu0.b32.cont [9/16] (narrow) %v1606_v52, 32 }
  0x54   : > { %1659 = vxpose.xlu1.b32.cont [9/16] (narrow) %v1658_v53, 32 }
  0x55   : > { %977 = vperm.xlu2 %1694, %v973_v38   ;;  %v732_v38 = vld [vmem:[%s2182_s3] sm:$0xf] }
  0x5a   : > { %1609 = vxpose.xlu0.b32.cont [10/16] (narrow) %v1608_v58, 32 }
  0x5c   : > { %1661 = vxpose.xlu1.b32.cont [10/16] (narrow) %v1660_v59, 32 }
  0x5d   : > { %982 = vperm.xlu2 %1694, %v974_v41  }
  0x62   : > { %1611 = vxpose.xlu0.b32.cont [11/16] (narrow) %v1610_v0, 32 }
  0x64   : > { %1663 = vxpose.xlu1.b32.cont [11/16] (narrow) %v1662_v1, 32 }
  0x65   : > { %1083 = vperm.xlu2 %1694, %v1077_v44  }
  0x6a   : > { %1613 = vxpose.xlu0.b32.cont [12/16] (narrow) %v1612_v6, 32 }
  0x6c   : > { %1665 = vxpose.xlu1.b32.cont [12/16] (narrow) %v1664_v7, 32 }
  0x6d   : > { %1088 = vperm.xlu2 %1694, %v1078_v47  }
  0x72   : > { %1615 = vxpose.xlu0.b32.cont [13/16] (narrow) %v1614_v14, 32 }
  0x74   : > { %1667 = vxpose.xlu1.b32.cont [13/16] (narrow) %v1666_v15, 32 }
  0x75   : > { %1093 = vperm.xlu2 %1694, %v1079_v4  }
  0x7a   : > { %1617 = vxpose.xlu0.b32.cont [14/16] (narrow) %v1616_v21, 32 }
  0x7b   : > { %v652_v14 = vpop.permute.xlu2 %651 }
  0x7c   : > { %1669 = vxpose.xlu1.b32.cont [14/16] (narrow) %v1668_v22, 32 }
  0x7d   : > { %1098 = vperm.xlu2 %1694, %v1080_v12  }
  0x82   : > { %1619 = vxpose.xlu0.b32.cont [15/16] (narrow) %v1618_v27, 32 }
  0x83   : > { %v657_v19 = vpop.permute.xlu2 %656 }
  0x84   : > { %1671 = vxpose.xlu1.b32.cont [15/16] (narrow) %v1670_v28, 32 }
  0x8a   : > { %1621 = vxpose.xlu0.b32.end [16/16] (narrow) %v1620_v33, 32 }
  0x8c   : > { %1673 = vxpose.xlu1.b32.end [16/16] (narrow) %v1672_v34, 32 }
  0xb6   : > { %v1622_v39 = vpop.trf.xlu0 }
  0xb7   : > { %v1623_v50 = vunpack.i.l.bf16 %v1622_v39  ;;  %v1626_v51 = vunpack.i.h.bf16 %v1622_v39 }
  0xb8   : > { %v1674_v40 = vpop.trf.xlu1 }
  0xb9   : > { %v1675_v7 = vunpack.i.l.bf16 %v1674_v40  ;;  %v1678_v8 = vunpack.i.h.bf16 %v1674_v40 }
  0xbe   : > { %v1627_v42 = vpop.trf.xlu0 }
  0xbf   : > { %v1628_v55 = vunpack.i.l.bf16 %v1627_v42  ;;  %v1631_v56 = vunpack.i.h.bf16 %v1627_v42 }
  0xc0   : > { %v1679_v43 = vpop.trf.xlu1 }
  0xc1   : > { %v1680_v2 = vunpack.i.l.bf16 %v1679_v43  ;;  %v1683_v3 = vunpack.i.h.bf16 %v1679_v43  ;;  %v641_v5 = vpack.c.bf16 %v1628_v55, %v1623_v50  ;;  %v642_v6 = vpack.c.bf16 %v1631_v56, %v1626_v51 }
  0xc3   : > { %v639_v9 = vpack.c.bf16 %v1680_v2, %v1675_v7  ;;  %v640_v10 = vpack.c.bf16 %v1683_v3, %v1678_v8 }
  0xc6   : > { %v1632_v45 = vpop.trf.xlu0 }
  0xc7   : > { %v1633_v48 = vunpack.i.l.bf16 %v1632_v45  ;;  %v1636_v49 = vunpack.i.h.bf16 %v1632_v45  ;;  %v741_v45 = vpop.permute.xlu2 %740 }
  0xc8   : > { %v1684_v46 = vpop.trf.xlu1 }
  0xc9   : > { %v1685_v53 = vunpack.i.l.bf16 %v1684_v46  ;;  %v1688_v54 = vunpack.i.h.bf16 %v1684_v46 }
  0xce   : > { %v1637_v52 = vpop.trf.xlu0 }
  0xcf   : > { %v1638_v58 = vunpack.i.l.bf16 %v1637_v52  ;;  %v1641_v59 = vunpack.i.h.bf16 %v1637_v52  ;;  %v812_v7 = vpop.permute.xlu2 %811 }
  0xd0   : > { %v1689_v57 = vpop.trf.xlu1 }
  0xd1   : > { %v1690_v60 = vunpack.i.l.bf16 %v1689_v57  ;;  %v1693_v61 = vunpack.i.h.bf16 %v1689_v57  ;;  %v645_v62 = vpack.c.bf16 %v1638_v58, %v1633_v48  ;;  %v646_v63 = vpack.c.bf16 %v1641_v59, %v1636_v49  ;;  %v803_v57 = vld [vmem:[%s2184_s5] sm:$0x3] }
  0xd3   : > { %v643_v0 = vpack.c.bf16 %v1690_v60, %v1685_v53  ;;  %v644_v1 = vpack.c.bf16 %v1693_v61, %v1688_v54  ;;  %702 = vmatpush.bf16.msra.mxu2 %v645_v62  ;;  %716 = vmatpush.bf16.msra.mxu3 %v646_v63 }
  0xd5   : > { %674 = vmatpush.bf16.msra.mxu0 %v643_v0  ;;  %688 = vmatpush.bf16.msra.mxu1 %v644_v1 }
  0xd7   : > { %703 = vmatpush.bf16.msra.mxu2 %v641_v5  ;;  %717 = vmatpush.bf16.msra.mxu3 %v642_v6 }
  0xd9   : > { %675 = vmatpush.bf16.msra.mxu0 %v639_v9  ;;  %689 = vmatpush.bf16.msra.mxu1 %v640_v10 }
  0xda   : > { %1536 = vmatmul.msk.bf16.vlgmr.msra.gmra.mxu2 %vm664_vm0, %v1576_v11  ;;  %1537 = vmatmul.msk.bf16.vlgmr.msra.gmra.mxu3 %vm664_vm0, %v1576_v11 }
  0xdc   : > { %1534 = vmatmul.msk.bf16.vlgmr.msra.gmra.mxu0 %vm664_vm0, %v1576_v11  ;;  %1535 = vmatmul.msk.bf16.vlgmr.msra.gmra.mxu1 %vm664_vm0, %v1576_v11 }
 0x159   : > { %v677_v15 = vpop.f32.mrf.mxu0  ;;  %v691_v16 = vpop.f32.mrf.mxu1 }
 0x15a   : > { %v678_v20 = vadd.f32 %v677_v15, %v652_v14  ;;  %v692_v21 = vadd.f32 %v691_v16, %v652_v14 }
 0x15c   : > { %v724_v26 = vmax.f32 %v678_v20, 0.0  ;;  %v725_v27 = vmax.f32 %v692_v21, 0.0 }
 0x15d   : > { %v705_v17 = vpop.f32.mrf.mxu2  ;;  %v719_v18 = vpop.f32.mrf.mxu3 }
 0x15e   : > { %v706_v30 = vadd.f32 %v705_v17, %v652_v14  ;;  %v720_v31 = vadd.f32 %v719_v18, %v652_v14  ;;  %v883_v17 = vld [vmem:[%s2186_s7] sm:$0xf] }
 0x160   : > { %v726_v39 = vmax.f32 %v706_v30, 0.0  ;;  %v727_v40 = vmax.f32 %v720_v31, 0.0  ;;  %v892_v30 = vpop.permute.xlu2 %891 }
 0x161   : > { %v679_v22 = vpop.f32.mrf.mxu0  ;;  %v693_v23 = vpop.f32.mrf.mxu1 }
 0x162   : > { %v680_v24 = vadd.f32 %v679_v22, %v657_v19  ;;  %v694_v25 = vadd.f32 %v693_v23, %v657_v19 }
 0x164   : > { %v728_v28 = vmax.f32 %v680_v24, 0.0  ;;  %v729_v29 = vmax.f32 %v694_v25, 0.0 }
 0x165   : > { %v707_v32 = vpop.f32.mrf.mxu2  ;;  %v721_v33 = vpop.f32.mrf.mxu3 }
 0x166   : > { %v733_v34 = vpack.c.bf16 %v728_v28, %v724_v26  ;;  %v734_v35 = vpack.c.bf16 %v729_v29, %v725_v27  ;;  %v708_v36 = vadd.f32 %v707_v32, %v657_v19  ;;  %v722_v37 = vadd.f32 %v721_v33, %v657_v19 }
 0x168   : > { %754 = vmatpush.bf16.msrb.mxu0 %v733_v34  ;;  %767 = vmatpush.bf16.msrb.mxu1 %v734_v35  ;;  %v730_v41 = vmax.f32 %v708_v36, 0.0  ;;  %v731_v42 = vmax.f32 %v722_v37, 0.0 }
 0x16a   : > { %v735_v43 = vpack.c.bf16 %v730_v41, %v726_v39  ;;  %v736_v44 = vpack.c.bf16 %v731_v42, %v727_v40  ;;  %v1577_v41 = vld [vmem:[%s2188_s9] sm:$0xff] }
 0x16b   : > { %1538 = vmatmul.msk.bf16.vlgmr.msrb.gmra.mxu0 %vm743_vm1, %v732_v38  ;;  %1539 = vmatmul.msk.bf16.vlgmr.msrb.gmra.mxu1 %vm743_vm1, %v732_v38 }
 0x16c   : > { %780 = vmatpush.bf16.msrb.mxu2 %v735_v43  ;;  %793 = vmatpush.bf16.msrb.mxu3 %v736_v44 }
 0x16f   : > { %1540 = vmatmul.msk.bf16.vlgmr.msrb.gmra.mxu2 %vm743_vm1, %v732_v38  ;;  %1541 = vmatmul.msk.bf16.vlgmr.msrb.gmra.mxu3 %vm743_vm1, %v732_v38 }
 0x1e8   : > { %v756_v46 = vpop.f32.mrf.mxu0  ;;  %v769_v47 = vpop.f32.mrf.mxu1 }
 0x1e9   : > { %v757_v48 = vadd.f32 %v756_v46, %v741_v45  ;;  %v770_v49 = vadd.f32 %v769_v47, %v741_v45 }
 0x1eb   : > { %v799_v50 = vmax.f32 %v757_v48, 0.0  ;;  %v800_v51 = vmax.f32 %v770_v49, 0.0 }
 0x1ed   : > { %v804_v52 = vpack.c.bf16 %v799_v50, %v799_v50  ;;  %v805_v53 = vpack.c.bf16 %v800_v51, %v800_v51 }
 0x1ef   : > { %v820_v54 = vsel %vm818_vm2, %v804_v52, 0  ;;  %v823_v55 = vsel %vm818_vm2, %v805_v53, 0 }
 0x1f0   : > { %v758_v56 = vpop.f32.mrf.mxu0  ;;  %838 = vmatpush.bf16.msra.mxu0 %v820_v54  ;;  %851 = vmatpush.bf16.msra.mxu1 %v823_v55  ;;  %v771_v58 = vpop.f32.mrf.mxu1 }
 0x1f1   : > { %v978_v56 = vpop.permute.xlu2 %977 }
 0x1f2   : > { %v782_v59 = vpop.f32.mrf.mxu2  ;;  %v795_v60 = vpop.f32.mrf.mxu3 }
 0x1f3   : > { %1542 = vmatmul.msk.bf16.vlgmr.msra.gmra.mxu0 %vm814_vm3, %v803_v57  ;;  %1543 = vmatmul.msk.bf16.vlgmr.msra.gmra.mxu1 %vm814_vm3, %v803_v57  ;;  %v783_v61 = vadd.f32 %v782_v59, %v741_v45  ;;  %v796_v62 = vadd.f32 %v795_v60, %v741_v45 }
 0x1f5   : > { %v801_v63 = vmax.f32 %v783_v61, 0.0  ;;  %v802_v0 = vmax.f32 %v796_v62, 0.0 }
 0x1f7   : > { %v806_v1 = vpack.c.bf16 %v801_v63, %v801_v63  ;;  %v807_v2 = vpack.c.bf16 %v802_v0, %v802_v0 }
 0x1f9   : > { %v826_v3 = vsel %vm818_vm2, %v806_v1, 0  ;;  %v829_v4 = vsel %vm818_vm2, %v807_v2, 0  ;;  %v983_v59 = vpop.permute.xlu2 %982 }
 0x1fa   : > { %864 = vmatpush.bf16.msra.mxu2 %v826_v3  ;;  %877 = vmatpush.bf16.msra.mxu3 %v829_v4  ;;  %v784_v5 = vpop.f32.mrf.mxu2  ;;  %v797_v6 = vpop.f32.mrf.mxu3 }
 0x1fd   : > { %1544 = vmatmul.msk.bf16.vlgmr.msra.gmra.mxu2 %vm814_vm3, %v803_v57  ;;  %1545 = vmatmul.msk.bf16.vlgmr.msra.gmra.mxu3 %vm814_vm3, %v803_v57 }
 0x270   : > { %v840_v8 = vpop.f32.mrf.mxu0  ;;  %v853_v9 = vpop.f32.mrf.mxu1 }
 0x271   : > { %v841_v10 = vadd.f32 %v840_v8, %v812_v7  ;;  %v854_v11 = vadd.f32 %v853_v9, %v812_v7  ;;  %v1578_v8 = vld [vmem:[%s2190_s11] sm:$0xff] }
 0x273   : > { %v884_v12 = vpack.c.bf16 %v841_v10, %v841_v10  ;;  %v885_v14 = vpack.c.bf16 %v854_v11, %v854_v11  ;;  %v1579_v11 = vld [vmem:[%s2190_s11 + $0x8] sm:$0xff] }
 0x275   : > { %v900_v15 = vsel %vm898_vm4, %v884_v12, 0  ;;  %v903_v16 = vsel %vm898_vm4, %v885_v14, 0 }
 0x276   : > { %918 = vmatpush.bf16.msrb.mxu0 %v900_v15  ;;  %931 = vmatpush.bf16.msrb.mxu1 %v903_v16 }
 0x278   : > { %v842_v18 = vpop.f32.mrf.mxu0  ;;  %v855_v19 = vpop.f32.mrf.mxu1 }
 0x279   : > { %1546 = vmatmul.msk.bf16.vlgmr.msrb.gmra.mxu0 %vm894_vm5, %v883_v17  ;;  %1547 = vmatmul.msk.bf16.vlgmr.msrb.gmra.mxu1 %vm894_vm5, %v883_v17 }
 0x280   : > { %v866_v20 = vpop.f32.mrf.mxu2  ;;  %v879_v21 = vpop.f32.mrf.mxu3 }
 0x281   : > { %v867_v22 = vadd.f32 %v866_v20, %v812_v7  ;;  %v880_v23 = vadd.f32 %v879_v21, %v812_v7 }
 0x283   : > { %v886_v24 = vpack.c.bf16 %v867_v22, %v867_v22  ;;  %v887_v25 = vpack.c.bf16 %v880_v23, %v880_v23 }
 0x285   : > { %v906_v26 = vsel %vm898_vm4, %v886_v24, 0  ;;  %v909_v27 = vsel %vm898_vm4, %v887_v25, 0  ;;  %v2016_v25 = vpop.permute.xlu2 %1083 }
 0x286   : > { %944 = vmatpush.bf16.msrb.mxu2 %v906_v26  ;;  %957 = vmatpush.bf16.msrb.mxu3 %v909_v27 }
 0x288   : > { %v868_v28 = vpop.f32.mrf.mxu2  ;;  %v881_v29 = vpop.f32.mrf.mxu3 }
 0x289   : > { %1548 = vmatmul.msk.bf16.vlgmr.msrb.gmra.mxu2 %vm894_vm5, %v883_v17  ;;  %1549 = vmatmul.msk.bf16.vlgmr.msrb.gmra.mxu3 %vm894_vm5, %v883_v17 }
 0x2f6   : > { %v920_v31 = vpop.f32.mrf.mxu0  ;;  %v933_v32 = vpop.f32.mrf.mxu1 }
 0x2f7   : > { %v921_v33 = vadd.f32 %v920_v31, %v892_v30  ;;  %v934_v34 = vadd.f32 %v933_v32, %v892_v30 }
 0x2f9   : > { %v963_v35 = vmax.f32 %v921_v33, 0.0  ;;  %v964_v36 = vmax.f32 %v934_v34, 0.0 }
 0x2fb   : > { %v969_v37 = vpack.c.bf16 %v963_v35, %v963_v35  ;;  %v970_v38 = vpack.c.bf16 %v964_v36, %v964_v36 }
 0x2fd   : > { %v994_v39 = vsel %vm818_vm2, %v969_v37, 0  ;;  %v997_v40 = vsel %vm818_vm2, %v970_v38, 0 }
 0x2fe   : > { %v922_v42 = vpop.f32.mrf.mxu0  ;;  %1012 = vmatpush.bf16.msra.mxu0 %v994_v39  ;;  %1026 = vmatpush.bf16.msra.mxu1 %v997_v40  ;;  %v935_v43 = vpop.f32.mrf.mxu1 }
 0x301   : > { %1554 = vmatmul.msk.bf16.vlgmr.msra.gmra.mxu0 %vm814_vm3, %v1577_v41  ;;  %1555 = vmatmul.msk.bf16.vlgmr.msra.gmra.mxu1 %vm814_vm3, %v1577_v41 }
 0x30c   : > { %v946_v44 = vpop.f32.mrf.mxu2  ;;  %v959_v45 = vpop.f32.mrf.mxu3 }
 0x30d   : > { %v947_v46 = vadd.f32 %v946_v44, %v892_v30  ;;  %v960_v47 = vadd.f32 %v959_v45, %v892_v30  ;;  %v2020_v30 = vpop.permute.xlu2 %1088 }
 0x30f   : > { %v965_v48 = vmax.f32 %v947_v46, 0.0  ;;  %v966_v49 = vmax.f32 %v960_v47, 0.0 }
 0x311   : > { %v971_v50 = vpack.c.bf16 %v965_v48, %v965_v48  ;;  %v972_v51 = vpack.c.bf16 %v966_v49, %v966_v49 }
 0x313   : > { %v1000_v52 = vsel %vm818_vm2, %v971_v50, 0  ;;  %v1003_v53 = vsel %vm818_vm2, %v972_v51, 0 }
 0x314   : > { %1040 = vmatpush.bf16.msra.mxu2 %v1000_v52  ;;  %1054 = vmatpush.bf16.msra.mxu3 %v1003_v53  ;;  %v948_v54 = vpop.f32.mrf.mxu2  ;;  %v961_v55 = vpop.f32.mrf.mxu3 }
 0x315   : > { %v2024_v42 = vpop.permute.xlu2 %1093 }
 0x317   : > { %1556 = vmatmul.msk.bf16.vlgmr.msra.gmra.mxu2 %vm814_vm3, %v1577_v41  ;;  %1557 = vmatmul.msk.bf16.vlgmr.msra.gmra.mxu3 %vm814_vm3, %v1577_v41 }
 0x37e   : > { %v1014_v57 = vpop.f32.mrf.mxu0  ;;  %v1028_v58 = vpop.f32.mrf.mxu1 }
 0x37f   : > { %v1015_v60 = vadd.f32 %v1014_v57, %v978_v56  ;;  %v1029_v61 = vadd.f32 %v1028_v58, %v978_v56 }
 0x381   : > { %v1061_v2 = vmax.f32 %v1015_v60, 0.0  ;;  %v1062_v3 = vmax.f32 %v1029_v61, 0.0  ;;  %v2028_v60 = vpop.permute.xlu2 %1098 }
 0x386   : > { %v1016_v62 = vpop.f32.mrf.mxu0  ;;  %v1030_v63 = vpop.f32.mrf.mxu1 }
 0x387   : > { %v1017_v0 = vadd.f32 %v1016_v62, %v983_v59  ;;  %v1031_v1 = vadd.f32 %v1030_v63, %v983_v59 }
 0x389   : > { %v1065_v4 = vmax.f32 %v1017_v0, 0.0  ;;  %v1066_v5 = vmax.f32 %v1031_v1, 0.0 }
 0x38b   : > { %v1073_v6 = vpack.c.bf16 %v1065_v4, %v1061_v2  ;;  %v1074_v7 = vpack.c.bf16 %v1066_v5, %v1062_v3 }
 0x38d   : > { %1124 = vmatpush.bf16.msrb.mxu0 %v1073_v6  ;;  %1143 = vmatpush.bf16.msrb.mxu1 %v1074_v7 }
 0x390   : > { %1566 = vmatmul.msk.bf16.vlgmr.msrb.gmra.mxu0 %vm743_vm1, %v1578_v8  ;;  %1568 = vmatmul.msk.bf16.vlgmr.msrb.gmra.mxu1 %vm743_vm1, %v1578_v8 }
 0x39a   : > { %v1042_v9 = vpop.f32.mrf.mxu2  ;;  %v1056_v10 = vpop.f32.mrf.mxu3 }
 0x39b   : > { %v1043_v12 = vadd.f32 %v1042_v9, %v978_v56  ;;  %v1057_v14 = vadd.f32 %v1056_v10, %v978_v56 }
 0x39d   : > { %v1063_v19 = vmax.f32 %v1043_v12, 0.0  ;;  %v1064_v20 = vmax.f32 %v1057_v14, 0.0 }
 0x3a0   : > { %1567 = vmatmul.msk.bf16.gmra.mxu0 %vm743_vm1, %v1579_v11  ;;  %1569 = vmatmul.msk.bf16.gmra.mxu1 %vm743_vm1, %v1579_v11 }
 0x3a2   : > { %v1044_v15 = vpop.f32.mrf.mxu2  ;;  %v1058_v16 = vpop.f32.mrf.mxu3 }
 0x3a3   : > { %v1045_v17 = vadd.f32 %v1044_v15, %v983_v59  ;;  %v1059_v18 = vadd.f32 %v1058_v16, %v983_v59 }
 0x3a5   : > { %v1067_v21 = vmax.f32 %v1045_v17, 0.0  ;;  %v1068_v22 = vmax.f32 %v1059_v18, 0.0 }
 0x3a7   : > { %v1075_v23 = vpack.c.bf16 %v1067_v21, %v1063_v19  ;;  %v1076_v24 = vpack.c.bf16 %v1068_v22, %v1064_v20 }
 0x3a9   : > { %1162 = vmatpush.bf16.msrb.mxu2 %v1075_v23  ;;  %1181 = vmatpush.bf16.msrb.mxu3 %v1076_v24 }
 0x3ac   : > { %1570 = vmatmul.msk.bf16.vlgmr.msrb.gmra.mxu2 %vm743_vm1, %v1578_v8  ;;  %1572 = vmatmul.msk.bf16.vlgmr.msrb.gmra.mxu3 %vm743_vm1, %v1578_v8 }
 0x3bc   : > { %1571 = vmatmul.msk.bf16.gmra.mxu2 %vm743_vm1, %v1579_v11  ;;  %1573 = vmatmul.msk.bf16.gmra.mxu3 %vm743_vm1, %v1579_v11 }
 0x40d   : > { %v1126_v26 = vpop.f32.mrf.mxu0  ;;  %v1145_v27 = vpop.f32.mrf.mxu1 }
 0x40e   : > { %v1127_v28 = vadd.f32 %v1126_v26, %v2016_v25  ;;  %v1146_v29 = vadd.f32 %v1145_v27, %v2016_v25 }
 0x410   : > { %v1193_v31 = vsub.f32 0.0, %v1127_v28  ;;  %v1194_v32 = vsub.f32 0.0, %v1146_v29 }
 0x412   : > { %v1209_v33 = vmul.f32 1.442695, %v1193_v31  ;;  %v1211_v34 = vmul.f32 1.442695, %v1194_v32 }
 0x414   : > { %1696 = vpow2.f32 %v1209_v33 }
 0x415   : > { %1698 = vpow2.f32 %v1211_v34  ;;  %v1128_v35 = vpop.f32.mrf.mxu0  ;;  %v1147_v36 = vpop.f32.mrf.mxu1 }
 0x416   : > { %v1129_v37 = vadd.f32 %v1128_v35, %v2020_v30  ;;  %v1148_v38 = vadd.f32 %v1147_v36, %v2020_v30 }
 0x418   : > { %v1197_v39 = vsub.f32 0.0, %v1129_v37  ;;  %v1198_v40 = vsub.f32 0.0, %v1148_v38 }
 0x41a   : > { %v1697_v41 = vpop.eup %1696  ;;  %v1217_v43 = vmul.f32 1.442695, %v1197_v39  ;;  %v1219_v46 = vmul.f32 1.442695, %v1198_v40 }
 0x41b   : > { %v1699_v44 = vpop.eup %1698  ;;  %v1241_v45 = vadd.f32 1.0, %v1697_v41 }
 0x41c   : > { %v1242_v47 = vadd.f32 1.0, %v1699_v44  ;;  %1700 = vpow2.f32 %v1217_v43 }
 0x41d   : > { %1702 = vrcp.f32 %v1241_v45  ;;  %v1131_v48 = vpop.f32.mrf.mxu0  ;;  %v1150_v49 = vpop.f32.mrf.mxu1 }
 0x41e   : > { %1704 = vrcp.f32 %v1242_v47  ;;  %v1132_v50 = vadd.f32 %v1131_v48, %v2024_v42  ;;  %v1151_v51 = vadd.f32 %v1150_v49, %v2024_v42 }
 0x41f   : > { %1706 = vpow2.f32 %v1219_v46 }
 0x420   : > { %v1201_v52 = vsub.f32 0.0, %v1132_v50  ;;  %v1202_v53 = vsub.f32 0.0, %v1151_v51 }
 0x422   : > { %v1701_v54 = vpop.eup %1700  ;;  %v1225_v55 = vmul.f32 1.442695, %v1201_v52  ;;  %v1227_v56 = vmul.f32 1.442695, %v1202_v53 }
 0x423   : > { %v1703_v57 = vpop.eup %1702  ;;  %v1245_v58 = vadd.f32 1.0, %v1701_v54 }
 0x424   : > { %v1705_v59 = vpop.eup %1704  ;;  %1708 = vpow2.f32 %v1225_v55  ;;  %1273 = vxpose.xlu2.b32.start [1/4] (short) %v1703_v57, 128 }
 0x425   : > { %v1707_v61 = vpop.eup %1706  ;;  %1710 = vrcp.f32 %v1245_v58  ;;  %1305 = vxpose.xlu0.b32.start [1/4] (short) %v1705_v59, 128  ;;  %v1133_v62 = vpop.f32.mrf.mxu0 }
 0x426   : > { %v1152_v63 = vpop.f32.mrf.mxu1  ;;  %v1246_v0 = vadd.f32 1.0, %v1707_v61  ;;  %1712 = vpow2.f32 %v1227_v56  ;;  %v1134_v1 = vadd.f32 %v1133_v62, %v2028_v60 }
 0x427   : > { %v1153_v2 = vadd.f32 %v1152_v63, %v2028_v60 }
 0x428   : > { %1714 = vrcp.f32 %v1246_v0  ;;  %v1205_v3 = vsub.f32 0.0, %v1134_v1 }
 0x429   : > { %v1206_v4 = vsub.f32 0.0, %v1153_v2 }
 0x42a   : > { %v1709_v5 = vpop.eup %1708  ;;  %v1233_v6 = vmul.f32 1.442695, %v1205_v3 }
 0x42b   : > { %v1235_v7 = vmul.f32 1.442695, %v1206_v4  ;;  %v1711_v8 = vpop.eup %1710  ;;  %v1249_v9 = vadd.f32 1.0, %v1709_v5 }
 0x42c   : > { %v1713_v10 = vpop.eup %1712  ;;  %1716 = vpow2.f32 %v1233_v6  ;;  %1274 = vxpose.xlu2.b32.cont [2/4] (short) %v1711_v8, 128 }
 0x42d   : > { %1718 = vrcp.f32 %v1249_v9  ;;  %v1250_v11 = vadd.f32 1.0, %v1713_v10 }
 0x42e   : > { %v1715_v12 = vpop.eup %1714  ;;  %1720 = vpow2.f32 %v1235_v7 }
 0x42f   : > { %1722 = vrcp.f32 %v1250_v11  ;;  %1306 = vxpose.xlu0.b32.cont [2/4] (short) %v1715_v12, 128  ;;  %v1164_v14 = vpop.f32.mrf.mxu2  ;;  %v1183_v53 = vpop.f32.mrf.mxu3 }
 0x430   : > { %v1165_v15 = vadd.f32 %v1164_v14, %v2016_v25  ;;  %v1184_v54 = vadd.f32 %v1183_v53, %v2016_v25 }
 0x432   : > { %v1717_v16 = vpop.eup %1716  ;;  %v1195_v19 = vsub.f32 0.0, %v1165_v15  ;;  %v1196_v56 = vsub.f32 0.0, %v1184_v54 }
 0x433   : > { %v1719_v17 = vpop.eup %1718  ;;  %v1253_v18 = vadd.f32 1.0, %v1717_v16 }
 0x434   : > { %v1721_v20 = vpop.eup %1720  ;;  %1275 = vxpose.xlu2.b32.cont [3/4] (short) %v1719_v17, 128  ;;  %v1213_v23 = vmul.f32 1.442695, %v1195_v19  ;;  %v1215_v57 = vmul.f32 1.442695, %v1196_v56 }
 0x435   : > { %v1723_v21 = vpop.eup %1722  ;;  %1724 = vrcp.f32 %v1253_v18  ;;  %v1254_v22 = vadd.f32 1.0, %v1721_v20 }
 0x437   : > { %1726 = vrcp.f32 %v1254_v22  ;;  %1307 = vxpose.xlu0.b32.cont [3/4] (short) %v1723_v21, 128  ;;  %v1166_v24 = vpop.f32.mrf.mxu2  ;;  %v1185_v55 = vpop.f32.mrf.mxu3 }
 0x438   : > { %1728 = vpow2.f32 %v1213_v23  ;;  %v1167_v26 = vadd.f32 %v1166_v24, %v2020_v30  ;;  %v1186_v58 = vadd.f32 %v1185_v55, %v2020_v30 }
 0x43a   : > { %v1199_v28 = vsub.f32 0.0, %v1167_v26  ;;  %v1200_v61 = vsub.f32 0.0, %v1186_v58 }
 0x43b   : > { %v1725_v27 = vpop.eup %1724 }
 0x43c   : > { %1276 = vxpose.xlu2.b32.end [4/4] (short) %v1725_v27, 128  ;;  %v1221_v31 = vmul.f32 1.442695, %v1199_v28  ;;  %v1223_v62 = vmul.f32 1.442695, %v1200_v61 }
 0x43d   : > { %v1727_v29 = vpop.eup %1726 }
 0x43e   : > { %v1729_v32 = vpop.eup %1728  ;;  %1730 = vpow2.f32 %v1221_v31 }
 0x43f   : > { %v1243_v33 = vadd.f32 1.0, %v1729_v32  ;;  %1308 = vxpose.xlu0.b32.end [4/4] (short) %v1727_v29, 128  ;;  %v1169_v34 = vpop.f32.mrf.mxu2  ;;  %v1188_v59 = vpop.f32.mrf.mxu3 }
 0x440   : > { %v1170_v35 = vadd.f32 %v1169_v34, %v2024_v42  ;;  %v1189_v63 = vadd.f32 %v1188_v59, %v2024_v42 }
 0x441   : > { %1732 = vrcp.f32 %v1243_v33 }
 0x442   : > { %v1203_v36 = vsub.f32 0.0, %v1170_v35  ;;  %v1204_v1 = vsub.f32 0.0, %v1189_v63 }
 0x444   : > { %v1731_v37 = vpop.eup %1730  ;;  %v1229_v38 = vmul.f32 1.442695, %v1203_v36  ;;  %v1231_v4 = vmul.f32 1.442695, %v1204_v1 }
 0x445   : > { %v1247_v39 = vadd.f32 1.0, %v1731_v37 }
 0x446   : > { %1734 = vpow2.f32 %v1229_v38 }
 0x447   : > { %v1733_v40 = vpop.eup %1732  ;;  %1736 = vrcp.f32 %v1247_v39  ;;  %v1171_v41 = vpop.f32.mrf.mxu2 }
 0x448   : > { %1337 = vxpose.xlu1.b32.start [1/4] (short) %v1733_v40, 128  ;;  %v1172_v43 = vadd.f32 %v1171_v41, %v2028_v60  ;;  %v1190_v3 = vpop.f32.mrf.mxu3 }
 0x449   : > { %v1191_v5 = vadd.f32 %v1190_v3, %v2028_v60 }
 0x44a   : > { %v1207_v44 = vsub.f32 0.0, %v1172_v43 }
 0x44b   : > { %v1208_v6 = vsub.f32 0.0, %v1191_v5 }
 0x44c   : > { %v1735_v45 = vpop.eup %1734  ;;  %v1237_v46 = vmul.f32 1.442695, %v1207_v44 }
 0x44d   : > { %v1737_v47 = vpop.eup %1736  ;;  %v1251_v48 = vadd.f32 1.0, %v1735_v45  ;;  %v1239_v8 = vmul.f32 1.442695, %v1208_v6 }
 0x44e   : > { %1738 = vpow2.f32 %v1237_v46 }
 0x44f   : > { %1740 = vrcp.f32 %v1251_v48 }
 0x450   : > { %1338 = vxpose.xlu1.b32.cont [2/4] (short) %v1737_v47, 128 }
 0x454   : > { %v1739_v49 = vpop.eup %1738 }
 0x455   : > { %v1741_v50 = vpop.eup %1740  ;;  %v1255_v51 = vadd.f32 1.0, %v1739_v49 }
 0x457   : > { %1742 = vrcp.f32 %v1255_v51 }
 0x458   : > { %1339 = vxpose.xlu1.b32.cont [3/4] (short) %v1741_v50, 128  ;;  %1744 = vpow2.f32 %v1215_v57 }
 0x459   : > { %1746 = vpow2.f32 %v1223_v62 }
 0x45d   : > { %v1743_v52 = vpop.eup %1742 }
 0x45e   : > { %v1745_v0 = vpop.eup %1744 }
 0x45f   : > { %v1244_v2 = vadd.f32 1.0, %v1745_v0  ;;  %v1747_v25 = vpop.eup %1746 }
 0x460   : > { %1340 = vxpose.xlu1.b32.end [4/4] (short) %v1743_v52, 128  ;;  %v1248_v7 = vadd.f32 1.0, %v1747_v25 }
 0x461   : > { %1748 = vrcp.f32 %v1244_v2 }
 0x462   : > { %1750 = vpow2.f32 %v1231_v4 }
 0x463   : > { %1752 = vrcp.f32 %v1248_v7 }
 0x464   : > { %1754 = vpow2.f32 %v1239_v8 }
 0x467   : > { %v1749_v30 = vpop.eup %1748 }
 0x468   : > { %v1751_v9 = vpop.eup %1750 }
 0x469   : > { %v1252_v42 = vadd.f32 1.0, %v1751_v9  ;;  %v1753_v10 = vpop.eup %1752 }
 0x46a   : > { %v1755_v11 = vpop.eup %1754 }
 0x46b   : > { %1756 = vrcp.f32 %v1252_v42  ;;  %v1256_v60 = vadd.f32 1.0, %v1755_v11 }
 0x46d   : > { %1758 = vrcp.f32 %v1256_v60 }
 0x471   : > { %v1757_v12 = vpop.eup %1756 }
 0x473   : > { %v1759_v14 = vpop.eup %1758 }
 0x4a4   : > { %1369 = vxpose.xlu2.b32.start [1/4] (short) %v1749_v30, 128 }
 0x4a6   : > { %1695 = vset.pattern.permute.xlu0 %v1768_v13 }
 0x4ac   : > { %1370 = vxpose.xlu2.b32.cont [2/4] (short) %v1753_v10, 128 }
 0x4b4   : > { %1371 = vxpose.xlu2.b32.cont [3/4] (short) %v1757_v12, 128 }
 0x4bc   : > { %1372 = vxpose.xlu2.b32.end [4/4] (short) %v1759_v14, 128 }
 0x4bd   : > { %v1289_v13 = vpop.trf.xlu2 }
 0x4be   : > { %1401 = vst.msk [vmem:[%s2046_s26] sm:$0xff] %vm664_vm0, %v1289_v13 }
 0x4c5   : > { %v1290_v15 = vpop.trf.xlu2 }
 0x4c6   : > { %1402 = vst.msk [vmem:[%s2046_s26 + $0x8] sm:$0xff] %vm664_vm0, %v1290_v15 }
 0x4cb   : > { %v1321_v28 = vpop.trf.xlu0 }
 0x4cc   : > { %1417 = vst.msk [vmem:[%s2046_s26 + $0x80] sm:$0xff] %vm664_vm0, %v1321_v28 }
 0x4cd   : > { %v1291_v16 = vpop.trf.xlu2 }
 0x4ce   : > { %1403 = vst.msk [vmem:[%s2046_s26 + $0x10] sm:$0xff] %vm664_vm0, %v1291_v16 }
 0x4d3   : > { %v1322_v32 = vpop.trf.xlu0 }
 0x4d4   : > { %1418 = vst.msk [vmem:[%s2046_s26 + $0x88] sm:$0xff] %vm664_vm0, %v1322_v32 }
 0x4d5   : > { %v1292_v17 = vpop.trf.xlu2 }
 0x4d6   : > { %1404 = vst.msk [vmem:[%s2046_s26 + $0x18] sm:$0xff] %vm664_vm0, %v1292_v17 }
 0x4db   : > { %v1323_v35 = vpop.trf.xlu0 }
 0x4dc   : > { %1419 = vst.msk [vmem:[%s2046_s26 + $0x90] sm:$0xff] %vm664_vm0, %v1323_v35 }
 0x4dd   : > { %v1293_v18 = vpop.trf.xlu2 }
 0x4de   : > { %1405 = vst.msk [vmem:[%s2046_s26 + $0x20] sm:$0xff] %vm664_vm0, %v1293_v18 }
 0x4e3   : > { %v1324_v38 = vpop.trf.xlu0 }
 0x4e4   : > { %1420 = vst.msk [vmem:[%s2046_s26 + $0x98] sm:$0xff] %vm664_vm0, %v1324_v38 }
 0x4e5   : > { %v1294_v19 = vpop.trf.xlu2 }
 0x4e6   : > { %1406 = vst.msk [vmem:[%s2046_s26 + $0x28] sm:$0xff] %vm664_vm0, %v1294_v19 }
 0x4eb   : > { %v1325_v41 = vpop.trf.xlu0 }
 0x4ec   : > { %v1353_v27 = vpop.trf.xlu1  ;;  %1421 = vst.msk [vmem:[%s2046_s26 + $0xa0] sm:$0xff] %vm664_vm0, %v1325_v41 }
 0x4ed   : > { %v1295_v20 = vpop.trf.xlu2  ;;  %1433 = vst.msk [vmem:[%s2046_s26 + $0x100] sm:$0xff] %vm664_vm0, %v1353_v27 }
 0x4ee   : > { %1407 = vst.msk [vmem:[%s2046_s26 + $0x30] sm:$0xff] %vm664_vm0, %v1295_v20 }
 0x4f3   : > { %v1326_v45 = vpop.trf.xlu0 }
 0x4f4   : > { %v1354_v31 = vpop.trf.xlu1  ;;  %1422 = vst.msk [vmem:[%s2046_s26 + $0xa8] sm:$0xff] %vm664_vm0, %v1326_v45 }
 0x4f5   : > { %v1296_v21 = vpop.trf.xlu2  ;;  %1434 = vst.msk [vmem:[%s2046_s26 + $0x108] sm:$0xff] %vm664_vm0, %v1354_v31 }
 0x4f6   : > { %1408 = vst.msk [vmem:[%s2046_s26 + $0x38] sm:$0xff] %vm664_vm0, %v1296_v21 }
 0x4fb   : > { %v1327_v48 = vpop.trf.xlu0 }
 0x4fc   : > { %v1355_v34 = vpop.trf.xlu1  ;;  %1423 = vst.msk [vmem:[%s2046_s26 + $0xb0] sm:$0xff] %vm664_vm0, %v1327_v48 }
 0x4fd   : > { %v1297_v22 = vpop.trf.xlu2  ;;  %1435 = vst.msk [vmem:[%s2046_s26 + $0x110] sm:$0xff] %vm664_vm0, %v1355_v34 }
 0x4fe   : > { %1409 = vst.msk [vmem:[%s2046_s26 + $0x40] sm:$0xff] %vm664_vm0, %v1297_v22 }
 0x503   : > { %v1328_v51 = vpop.trf.xlu0 }
 0x504   : > { %v1356_v37 = vpop.trf.xlu1  ;;  %1424 = vst.msk [vmem:[%s2046_s26 + $0xb8] sm:$0xff] %vm664_vm0, %v1328_v51 }
 0x505   : > { %v1298_v23 = vpop.trf.xlu2  ;;  %1436 = vst.msk [vmem:[%s2046_s26 + $0x118] sm:$0xff] %vm664_vm0, %v1356_v37 }
 0x506   : > { %1410 = vst.msk [vmem:[%s2046_s26 + $0x48] sm:$0xff] %vm664_vm0, %v1298_v23 }
 0x50b   : > { %v1329_v54 = vpop.trf.xlu0 }
 0x50c   : > { %v1357_v40 = vpop.trf.xlu1  ;;  %1425 = vst.msk [vmem:[%s2046_s26 + $0xc0] sm:$0xff] %vm664_vm0, %v1329_v54 }
 0x50d   : > { %v1299_v24 = vpop.trf.xlu2  ;;  %1437 = vst.msk [vmem:[%s2046_s26 + $0x120] sm:$0xff] %vm664_vm0, %v1357_v40 }
 0x50e   : > { %1411 = vst.msk [vmem:[%s2046_s26 + $0x50] sm:$0xff] %vm664_vm0, %v1299_v24 }
 0x513   : > { %v1330_v57 = vpop.trf.xlu0 }
 0x514   : > { %v1358_v44 = vpop.trf.xlu1  ;;  %1426 = vst.msk [vmem:[%s2046_s26 + $0xc8] sm:$0xff] %vm664_vm0, %v1330_v57 }
 0x515   : > { %v1300_v26 = vpop.trf.xlu2  ;;  %1438 = vst.msk [vmem:[%s2046_s26 + $0x128] sm:$0xff] %vm664_vm0, %v1358_v44 }
 0x516   : > { %1412 = vst.msk [vmem:[%s2046_s26 + $0x58] sm:$0xff] %vm664_vm0, %v1300_v26 }
 0x51b   : > { %v1331_v61 = vpop.trf.xlu0 }
 0x51c   : > { %v1359_v47 = vpop.trf.xlu1  ;;  %1427 = vst.msk [vmem:[%s2046_s26 + $0xd0] sm:$0xff] %vm664_vm0, %v1331_v61 }
 0x51d   : > { %v1301_v29 = vpop.trf.xlu2  ;;  %1439 = vst.msk [vmem:[%s2046_s26 + $0x130] sm:$0xff] %vm664_vm0, %v1359_v47 }
 0x51e   : > { %1413 = vst.msk [vmem:[%s2046_s26 + $0x60] sm:$0xff] %vm664_vm0, %v1301_v29 }
 0x523   : > { %v1332_v0 = vpop.trf.xlu0 }
 0x524   : > { %v1360_v50 = vpop.trf.xlu1  ;;  %1428 = vst.msk [vmem:[%s2046_s26 + $0xd8] sm:$0xff] %vm664_vm0, %v1332_v0 }
 0x525   : > { %v1302_v33 = vpop.trf.xlu2  ;;  %1440 = vst.msk [vmem:[%s2046_s26 + $0x138] sm:$0xff] %vm664_vm0, %v1360_v50 }
 0x526   : > { %1414 = vst.msk [vmem:[%s2046_s26 + $0x68] sm:$0xff] %vm664_vm0, %v1302_v33 }
 0x52b   : > { %v1333_v3 = vpop.trf.xlu0 }
 0x52c   : > { %v1361_v53 = vpop.trf.xlu1  ;;  %1429 = vst.msk [vmem:[%s2046_s26 + $0xe0] sm:$0xff] %vm664_vm0, %v1333_v3 }
 0x52d   : > { %v1303_v36 = vpop.trf.xlu2  ;;  %1441 = vst.msk [vmem:[%s2046_s26 + $0x140] sm:$0xff] %vm664_vm0, %v1361_v53 }
 0x52e   : > { %1415 = vst.msk [vmem:[%s2046_s26 + $0x70] sm:$0xff] %vm664_vm0, %v1303_v36 }
 0x533   : > { %v1334_v25 = vpop.trf.xlu0 }
 0x534   : > { %v1362_v56 = vpop.trf.xlu1  ;;  %1430 = vst.msk [vmem:[%s2046_s26 + $0xe8] sm:$0xff] %vm664_vm0, %v1334_v25 }
 0x535   : > { %v1304_v39 = vpop.trf.xlu2  ;;  %1442 = vst.msk [vmem:[%s2046_s26 + $0x148] sm:$0xff] %vm664_vm0, %v1362_v56 }
 0x536   : > { %1416 = vst.msk [vmem:[%s2046_s26 + $0x78] sm:$0xff] %vm664_vm0, %v1304_v39 }
 0x53b   : > { %v1335_v30 = vpop.trf.xlu0 }
 0x53c   : > { %v1363_v59 = vpop.trf.xlu1  ;;  %1431 = vst.msk [vmem:[%s2046_s26 + $0xf0] sm:$0xff] %vm664_vm0, %v1335_v30 }
 0x53d   : > { %v1385_v43 = vpop.trf.xlu2  ;;  %1443 = vst.msk [vmem:[%s2046_s26 + $0x150] sm:$0xff] %vm664_vm0, %v1363_v59 }
 0x53e   : > { %1449 = vst.msk [vmem:[%s2046_s26 + $0x180] sm:$0xff] %vm664_vm0, %v1385_v43 }
 0x543   : > { %v1336_v42 = vpop.trf.xlu0 }
 0x544   : > { %v1364_v63 = vpop.trf.xlu1  ;;  %1432 = vst.msk [vmem:[%s2046_s26 + $0xf8] sm:$0xff] %vm664_vm0, %v1336_v42 }
 0x545   : > { %v1386_v46 = vpop.trf.xlu2  ;;  %1444 = vst.msk [vmem:[%s2046_s26 + $0x158] sm:$0xff] %vm664_vm0, %v1364_v63 }
 0x546   : > { %1450 = vst.msk [vmem:[%s2046_s26 + $0x188] sm:$0xff] %vm664_vm0, %v1386_v46 }
 0x54c   : > { %v1365_v2 = vpop.trf.xlu1 }
 0x54d   : > { %v1387_v49 = vpop.trf.xlu2  ;;  %1445 = vst.msk [vmem:[%s2046_s26 + $0x160] sm:$0xff] %vm664_vm0, %v1365_v2 }
 0x54e   : > { %1451 = vst.msk [vmem:[%s2046_s26 + $0x190] sm:$0xff] %vm664_vm0, %v1387_v49 }
 0x554   : > { %v1366_v5 = vpop.trf.xlu1 }
 0x555   : > { %v1388_v52 = vpop.trf.xlu2  ;;  %1446 = vst.msk [vmem:[%s2046_s26 + $0x168] sm:$0xff] %vm664_vm0, %v1366_v5 }
 0x556   : > { %1452 = vst.msk [vmem:[%s2046_s26 + $0x198] sm:$0xff] %vm664_vm0, %v1388_v52 }
 0x55c   : > { %v1367_v7 = vpop.trf.xlu1 }
 0x55d   : > { %v1389_v55 = vpop.trf.xlu2  ;;  %1447 = vst.msk [vmem:[%s2046_s26 + $0x170] sm:$0xff] %vm664_vm0, %v1367_v7 }
 0x55e   : > { %1453 = vst.msk [vmem:[%s2046_s26 + $0x1a0] sm:$0xff] %vm664_vm0, %v1389_v55 }
 0x564   : > { %v1368_v9 = vpop.trf.xlu1 }
 0x565   : > { %v1390_v58 = vpop.trf.xlu2  ;;  %1448 = vst.msk [vmem:[%s2046_s26 + $0x178] sm:$0xff] %vm664_vm0, %v1368_v9 }
 0x566   : > { %1454 = vst.msk [vmem:[%s2046_s26 + $0x1a8] sm:$0xff] %vm664_vm0, %v1390_v58 }
 0x56d   : > { %v1391_v62 = vpop.trf.xlu2 }
 0x56e   : > { %1455 = vst.msk [vmem:[%s2046_s26 + $0x1b0] sm:$0xff] %vm664_vm0, %v1391_v62 }
 0x575   : > { %v1392_v1 = vpop.trf.xlu2 }
 0x576   : > { %1456 = vst.msk [vmem:[%s2046_s26 + $0x1b8] sm:$0xff] %vm664_vm0, %v1392_v1 }
 0x57d   : > { %v1393_v4 = vpop.trf.xlu2 }
 0x57e   : > { %1457 = vst.msk [vmem:[%s2046_s26 + $0x1c0] sm:$0xff] %vm664_vm0, %v1393_v4 }
 0x585   : > { %v1394_v6 = vpop.trf.xlu2 }
 0x586   : > { %1458 = vst.msk [vmem:[%s2046_s26 + $0x1c8] sm:$0xff] %vm664_vm0, %v1394_v6 }
 0x58d   : > { %v1395_v8 = vpop.trf.xlu2 }
 0x58e   : > { %1459 = vst.msk [vmem:[%s2046_s26 + $0x1d0] sm:$0xff] %vm664_vm0, %v1395_v8 }
 0x595   : > { %v1396_v10 = vpop.trf.xlu2 }
 0x596   : > { %1460 = vst.msk [vmem:[%s2046_s26 + $0x1d8] sm:$0xff] %vm664_vm0, %v1396_v10 }
 0x59d   : > { %v1397_v11 = vpop.trf.xlu2 }
 0x59e   : > { %1461 = vst.msk [vmem:[%s2046_s26 + $0x1e0] sm:$0xff] %vm664_vm0, %v1397_v11 }
 0x5a5   : > { %v1398_v60 = vpop.trf.xlu2 }
 0x5a6   : > { %1462 = vst.msk [vmem:[%s2046_s26 + $0x1e8] sm:$0xff] %vm664_vm0, %v1398_v60 }
 0x5ad   : > { %v1399_v12 = vpop.trf.xlu2 }
 0x5ae   : > { %1463 = vst.msk [vmem:[%s2046_s26 + $0x1f0] sm:$0xff] %vm664_vm0, %v1399_v12 }
 0x5b5   : > { %v1400_v14 = vpop.trf.xlu2 }
 0x5b6   : > { %1464 = vst.msk [vmem:[%s2046_s26 + $0x1f8] sm:$0xff] %vm664_vm0, %v1400_v14 }
 0x5b7 PF: > { %s23_s25 = sadd.s32 1, %s1766_s25  }
 0x5b8   : > { %p20_p4 = scmp.ge.s32.totalorder %s23_s25, 4  }
 0x5ba   :  { %22 = sbr.rel (!%p20_p4) target bundleno = 1 (0x1), region = 102 }

</bundles_post_ra>
